<compile_context>
chip_gen: v7x
topology: tpu7x:2x2x1
jax: 0.10.0
libtpu: 0.0.40
codegen_flags: <defaults>
</compile_context>

<pallas_src>
import functools

import jax
import jax.numpy as jnp
from jax.experimental import pallas as pl
from jax.experimental.pallas import tpu as pltpu

# TODO(synk): `compute_dice`'s exact epsilon is not shown in the source; 1e-5
# is the common default used by such implementations.
EPS = 1e-5

# Input working-set budget: n_inputs x 2 (double buffer) x block bytes.  8 MiB
# keeps 2-deep pipelining within v5e's 16 MiB default scoped VMEM limit.
_VMEM_INPUT_BUDGET = 8 * 1024 * 1024


def _choose_spatial_tile(hw, n_ch, n_inputs, itemsize):
    """Largest 128-multiple tile that divides `hw` and fits the VMEM budget."""
    per_elem = n_inputs * 2 * n_ch * itemsize
    max_tile = max(_VMEM_INPUT_BUDGET // per_elem, 1)
    if hw <= max_tile or hw % 128 != 0:
        return hw                      # single (full) tile
    tile = min((max_tile // 128) * 128, hw)
    tile = max(tile, 128)
    while tile > 128 and hw % tile != 0:
        tile -= 128
    return tile if hw % tile == 0 else hw


def _dice_partial_kernel(x_ref, t_ref, out_ref, *, ch_off):
    @pl.when(pl.program_id(1) == 0)
    def _():
        out_ref[...] = jnp.zeros_like(out_ref)

    x = x_ref[0, ch_off:, :].astype(jnp.float32)      # (c_eff, tile)
    t = t_ref[0, ch_off:, :].astype(jnp.float32)
    out_ref[0, :, 0:1] += jnp.sum(x * t, axis=-1, keepdims=True)   # intersection
    out_ref[0, :, 1:2] += jnp.sum(x + t, axis=-1, keepdims=True)   # fused denom


def _dice_partial_kernel_mask(x_ref, t_ref, m_ref, out_ref, *, ch_off, m_ch_off):
    @pl.when(pl.program_id(1) == 0)
    def _():
        out_ref[...] = jnp.zeros_like(out_ref)

    m = m_ref[0, m_ch_off:, :].astype(jnp.float32)    # (1 or c_eff, tile)
    x = x_ref[0, ch_off:, :].astype(jnp.float32) * m
    t = t_ref[0, ch_off:, :].astype(jnp.float32) * m
    out_ref[0, :, 0:1] += jnp.sum(x * t, axis=-1, keepdims=True)
    out_ref[0, :, 1:2] += jnp.sum(x + t, axis=-1, keepdims=True)


def dice_loss(inp, target, mask=None, reduction='mean',
              include_background=False):
    """Pallas DiceLoss forward. inp/target: (B, C, H, W) NCHW float arrays."""
    if reduction not in ('mean', 'sum'):
        raise NotImplementedError(reduction)
    B, C, H, W = inp.shape
    ch_off = 0 if include_background else 1
    c_eff = C - ch_off
    if c_eff <= 0:
        raise ValueError(
            "DiceLoss: no foreground channels (C == 1 with "
            "include_background=False).")
    HW = H * W

    x3 = inp.reshape(B, C, HW)        # free layout plumbing (NCHW contiguous)
    t3 = target.reshape(B, C, HW)

    n_inputs = 2 if mask is None else 3
    itemsize = max(jnp.dtype(inp.dtype).itemsize,
                   jnp.dtype(target.dtype).itemsize)
    tile = _choose_spatial_tile(HW, C, n_inputs, itemsize)
    n_s = HW // tile

    io_spec = pl.BlockSpec((1, C, tile), lambda b, s: (b, 0, s))
    out_spec = pl.BlockSpec((1, c_eff, 2), lambda b, s: (b, 0, 0))

    if mask is None:
        kern = functools.partial(_dice_partial_kernel, ch_off=ch_off)
        in_specs = [io_spec, io_spec]
        args = (x3, t3)
    else:
        Cm = mask.shape[1]
        if Cm == 1:
            m_ch_off = 0              # broadcast single-channel mask
        elif Cm == C:
            m_ch_off = ch_off         # mask carries background channel too
        elif Cm == c_eff:
            m_ch_off = 0              # mask already sliced to foreground
        else:
            raise ValueError(
                f"mask channels ({Cm}) incompatible with input channels ({C})")
        m3 = mask.reshape(B, Cm, HW)
        m_spec = pl.BlockSpec((1, Cm, tile), lambda b, s: (b, 0, s))
        kern = functools.partial(_dice_partial_kernel_mask,
                                 ch_off=ch_off, m_ch_off=m_ch_off)
        in_specs = [io_spec, io_spec, m_spec]
        args = (x3, t3, m3)

    partials = pl.pallas_call(
        kern,
        out_shape=jax.ShapeDtypeStruct((B, c_eff, 2), jnp.float32),
        grid_spec=pltpu.PrefetchScalarGridSpec(
            num_scalar_prefetch=0,
            grid=(B, n_s),
            in_specs=in_specs,
            out_specs=out_spec,
        ),
        compiler_params=pltpu.CompilerParams(
            dimension_semantics=("parallel", "arbitrary")),
    )(*args)

    inter = partials[..., 0]                       # (B, c_eff)
    denom = partials[..., 1]                       # (B, c_eff)
    dice = (2.0 * inter + EPS) / (denom + EPS)
    loss = 1.0 - dice
    return loss.mean() if reduction == 'mean' else loss.sum()


def dice_loss_ref(x, t, mask=None, reduction='mean', include_background=False):
    """Pure-JAX reference mirroring the PyTorch module."""
    if not include_background:
        x = x[:, 1:]
        t = t[:, 1:]
        if mask is not None and mask.shape[1] == x.shape[1] + 1:
            mask = mask[:, 1:]
    if mask is not None:
        x = x * mask
        t = t * mask
    inter = jnp.sum(x * t, axis=(2, 3))
    denom = jnp.sum(x, axis=(2, 3)) + jnp.sum(t, axis=(2, 3))
    dice = (2.0 * inter + EPS) / (denom + EPS)
    loss = 1.0 - dice
    return loss.mean() if reduction == 'mean' else loss.sum()


if __name__ == "__main__":
    key = jax.random.PRNGKey(0)
    k1, k2, k3 = jax.random.split(key, 3)
    B, C, H, W = 2, 4, 16, 16

    logits = jax.random.normal(k1, (B, C, H, W), dtype=jnp.float32)
    probs = jax.nn.softmax(logits, axis=1)                       # "input"
    labels = jax.random.randint(k2, (B, H, W), 0, C)
    target = jnp.transpose(
        jax.nn.one_hot(labels, C, dtype=jnp.float32), (0, 3, 1, 2))
    mask = (jax.random.uniform(k3, (B, 1, H, W)) > 0.3).astype(jnp.float32)

    # 1) unmasked, mean, drop background
    l1 = jax.block_until_ready(
        dice_loss(probs, target, mask=None,
                  reduction='mean', include_background=False))
    r1 = dice_loss_ref(probs, target, mask=None,
                       reduction='mean', include_background=False)
    assert jnp.allclose(l1, r1, atol=1e-5, rtol=1e-5), (l1, r1)

    # 2) single-channel mask, mean, drop background
    l2 = jax.block_until_ready(
        dice_loss(probs, target, mask=mask,
                  reduction='mean', include_background=False))
    r2 = dice_loss_ref(probs, target, mask=mask,
                       reduction='mean', include_background=False)
    assert jnp.allclose(l2, r2, atol=1e-5, rtol=1e-5), (l2, r2)

    # 3) unmasked, sum, keep background
    l3 = jax.block_until_ready(
        dice_loss(probs, target, mask=None,
                  reduction='sum', include_background=True))
    r3 = dice_loss_ref(probs, target, mask=None,
                       reduction='sum', include_background=True)
    assert jnp.allclose(l3, r3, atol=1e-5, rtol=1e-5), (l3, r3)

    print("KERNEL_OK")
</pallas_src>

<mosaic_0001>
module attributes {stable_mosaic.version = 11 : i64} {
  func.func @_dice_partial_kernel(%arg0: i32, %arg1: i32, %arg2: memref<1x4x256xf32, #tpu.memory_space<vmem>>, %arg3: memref<1x4x256xf32, #tpu.memory_space<vmem>>, %arg4: memref<1x3x2xf32, #tpu.memory_space<vmem>>) attributes {dimension_semantics = [#tpu.dimension_semantics<parallel>, #tpu.dimension_semantics<arbitrary>], iteration_bounds = array<i64: 2, 1>, scalar_prefetch = 0 : i64, scratch_operands = 0 : i64, tpu.core_type = #tpu.core_type<tc>, window_params = [{transform_indices = @transform_0, window_bounds = array<i64: 1, 4, 256>}, {transform_indices = @transform_1, window_bounds = array<i64: 1, 4, 256>}, {transform_indices = @transform_2, window_bounds = array<i64: 1, 3, 2>}]} {
    %c0_i32 = arith.constant 0 : i32
    %0 = arith.cmpi eq, %arg1, %c0_i32 : i32
    %1 = arith.extui %0 : i1 to i32
    %c0_i32_0 = arith.constant 0 : i32
    %2 = arith.cmpi ne, %1, %c0_i32_0 : i32
    scf.if %2 {
      %cst_18 = arith.constant 0.000000e+00 : f32
      %25 = vector.broadcast %cst_18 : f32 to vector<1x3x2xf32>
      %c0_19 = arith.constant 0 : index
      %c0_20 = arith.constant 0 : index
      %c0_21 = arith.constant 0 : index
      %26 = vector.load %arg4[%c0_19, %c0_20, %c0_21] : memref<1x3x2xf32, #tpu.memory_space<vmem>>, vector<1x3x2xf32>
      tpu.vector_store %arg4[%c0_19, %c0_20, %c0_21], %25 {strides = array<i32>} : memref<1x3x2xf32, #tpu.memory_space<vmem>>, vector<1x3x2xf32>,
    } else {
    }
    %c0 = arith.constant 0 : index
    %c1 = arith.constant 1 : index
    %c0_1 = arith.constant 0 : index
    %3 = vector.load %arg2[%c0, %c1, %c0_1] : memref<1x4x256xf32, #tpu.memory_space<vmem>>, vector<1x3x256xf32>
    %4 = vector.shape_cast %3 : vector<1x3x256xf32> to vector<3x256xf32>
    %c0_2 = arith.constant 0 : index
    %c1_3 = arith.constant 1 : index
    %c0_4 = arith.constant 0 : index
    %5 = vector.load %arg3[%c0_2, %c1_3, %c0_4] : memref<1x4x256xf32, #tpu.memory_space<vmem>>, vector<1x3x256xf32>
    %6 = vector.shape_cast %5 : vector<1x3x256xf32> to vector<3x256xf32>
    %c0_5 = arith.constant 0 : index
    %c0_6 = arith.constant 0 : index
    %c0_7 = arith.constant 0 : index
    %7 = vector.load %arg4[%c0_5, %c0_6, %c0_7] : memref<1x3x2xf32, #tpu.memory_space<vmem>>, vector<1x3x1xf32>
    %8 = vector.shape_cast %7 : vector<1x3x1xf32> to vector<3x1xf32>
    %9 = arith.mulf %4, %6 : vector<3x256xf32>
    %cst = arith.constant dense<0.000000e+00> : vector<3xf32>
    %10 = vector.multi_reduction <add>, %9, %cst [1] : vector<3x256xf32> to vector<3xf32>
    %11 = vector.shape_cast %10 : vector<3xf32> to vector<3x1xf32>
    %12 = arith.addf %8, %11 : vector<3x1xf32>
    %c0_8 = arith.constant 0 : index
    %c0_9 = arith.constant 0 : index
    %c0_10 = arith.constant 0 : index
    %13 = vector.load %arg4[%c0_8, %c0_9, %c0_10] : memref<1x3x2xf32, #tpu.memory_space<vmem>>, vector<1x3x1xf32>
    %14 = vector.shape_cast %13 : vector<1x3x1xf32> to vector<3x1xf32>
    %15 = vector.shape_cast %12 : vector<3x1xf32> to vector<1x3x1xf32>
    tpu.vector_store %arg4[%c0_8, %c0_9, %c0_10], %15 {strides = array<i32>} : memref<1x3x2xf32, #tpu.memory_space<vmem>>, vector<1x3x1xf32>,
    %c0_11 = arith.constant 0 : index
    %c0_12 = arith.constant 0 : index
    %c1_13 = arith.constant 1 : index
    %16 = vector.load %arg4[%c0_11, %c0_12, %c1_13] : memref<1x3x2xf32, #tpu.memory_space<vmem>>, vector<1x3x1xf32>
    %17 = vector.shape_cast %16 : vector<1x3x1xf32> to vector<3x1xf32>
    %18 = arith.addf %4, %6 : vector<3x256xf32>
    %cst_14 = arith.constant dense<0.000000e+00> : vector<3xf32>
    %19 = vector.multi_reduction <add>, %18, %cst_14 [1] : vector<3x256xf32> to vector<3xf32>
    %20 = vector.shape_cast %19 : vector<3xf32> to vector<3x1xf32>
    %21 = arith.addf %17, %20 : vector<3x1xf32>
    %c0_15 = arith.constant 0 : index
    %c0_16 = arith.constant 0 : index
    %c1_17 = arith.constant 1 : index
    %22 = vector.load %arg4[%c0_15, %c0_16, %c1_17] : memref<1x3x2xf32, #tpu.memory_space<vmem>>, vector<1x3x1xf32>
    %23 = vector.shape_cast %22 : vector<1x3x1xf32> to vector<3x1xf32>
    %24 = vector.shape_cast %21 : vector<3x1xf32> to vector<1x3x1xf32>
    tpu.vector_store %arg4[%c0_15, %c0_16, %c1_17], %24 {strides = array<i32>} : memref<1x3x2xf32, #tpu.memory_space<vmem>>, vector<1x3x1xf32>,
    return
  }
  func.func @transform_0(%arg0: i32, %arg1: i32) -> (i32, i32, i32) {
    %c0_i32 = arith.constant 0 : i32
    %c0_i32_0 = arith.constant 0 : i32
    return %arg0, %c0_i32, %arg1 : i32, i32, i32
  }
  func.func @transform_1(%arg0: i32, %arg1: i32) -> (i32, i32, i32) {
    %c0_i32 = arith.constant 0 : i32
    %c0_i32_0 = arith.constant 0 : i32
    return %arg0, %c0_i32, %arg1 : i32, i32, i32
  }
  func.func @transform_2(%arg0: i32, %arg1: i32) -> (i32, i32, i32) {
    %c0_i32 = arith.constant 0 : i32
    %c0_i32_0 = arith.constant 0 : i32
    %c0_i32_1 = arith.constant 0 : i32
    return %arg0, %c0_i32, %c0_i32_0 : i32, i32, i32
  }
}

</mosaic_0001>

<bundles_post_ra>
// kernel: tpu_custom_call.1
= control target key start
LH: loop header
LB: loop body
LE: loop exit
PB: predicated region body
PF: predicated region fallthrough
CT: control target
= control target key end

     0   :  { %7 = vsyncpa [#allocation3], 0  ;;  %s748_s0 = inlined_call_operand.hbm [shape: f32[2,4,256], index: 0, kind: input, shape index: {}]   ;;  %s749_s1 = inlined_call_operand.hbm [shape: f32[2,4,256], index: 1, kind: input, shape index: {}]   ;;  %s750_s2 = inlined_call_operand.vmem [shape: f32[2,3,2], index: 2, kind: output, shape index: {}]  }
   0x1   :  { %9 = vsyncpa [#allocation3 + $0x1], 0 }
   0x2   :  { %10 = vsyncpa [#allocation5], 0 }
   0x3   :  { %12 = vsyncpa [#allocation5 + $0x1], 0  ;;  %s576_s9 = smov 0   ;;  %s578_s10 = smov 0  }
   0x4   :  { %s580_s11 = smov 0   ;;  %s582_s12 = smov 0  }
   0x5   :  { %s584_s13 = smov 0   ;;  %s586_s14 = smov 0  }
   0x6 LB: > { %s363_s15 = sadd.s32 4294967295, %s556_s14   ;;  %s30_s16 = sadd.s32 1, %s552_s13  ;;  %s556_s14 = sphi %s586_s14, %s18_s14   ;;  %s552_s13 = sphi %s584_s13, %s764_s13   ;;  %s548_s12 = sphi %s582_s12, %s763_s12   ;;  %s544_s11 = sphi %s580_s11, %s762_s11   ;;  %s540_s10 = sphi %s578_s10, %s761_s10   ;;  %s536_s9 = sphi %s576_s9, %s760_s9  }
   0x7   : > { %p32_p0 = scmp.ge.s32.totalorder %s30_s16, 2  ;;  %s39_s17 = sadd.s32 1, %s544_s11 }
   0x8   : > { %p46_p1 = scmp.ne.s32.totalorder %s544_s11, %s540_s10  ;;  %p47_p2 = scmp.eq.s32.totalorder %s556_s14, 0 }
   0x9   : > { %s766_s16 = smov (%p32_p0, %s30_s16), 0  ;;  %p52_p4 = scmp.ne.s32.totalorder %s540_s10, %s536_s9 }
   0xa   : > { %p612_p3 = por %p47_p2, %p46_p1  ;;  %s34_s19 = ssub.s32 %s552_s13, %s766_s16 }
   0xb   : > { %p53_p5 = scmp.eq.s32.totalorder %s363_s15, 0  ;;  %p37_p6 = scmp.eq.s32.totalorder %s34_s19, 0 }
   0xc   : > { %p392_p8 = scmp.lt.s32.totalorder %s556_s14, 2  ;;  %s628_s22 = sand.u32 1, %s544_s11  }
   0xd   : > { %p619_p7 = por %p53_p5, %p52_p4  ;;  %s379_s23 = sshll.u32 %s552_s13, 7 }
   0xe   : > { %s625_s21 = scalar_select %p37_p6, %s544_s11, %s39_s17  }
   0xf   : > { %s753_s20 = scalar_select %p619_p7, 1, 0 }
  0x10   : > { %s367_s24 = sshll.u32 %s628_s22, 3  ;;  %s637_s27 = scalar_lea.hbm %s748_s0, %s379_s23 }
  0x11   : > { %s134_s28 = scalar_lea.vmem [#allocation2], %s367_s24  ;;  %p643_p9 = pnand %p392_p8, %p612_p3 }
  0x12   : > { %s144_s29 = sshll.u32 %s134_s28, 4  ;;  %s131_s3 = scalar_lea.sflag [#allocation3], %s628_s22  ;;  %s647_s29 = int_to_ptr.vmem [resolvable:$true] %s144_s29 }
  0x13   : > { %s442_s4 = scalar_lea.hbm %s637_s27, 128  ;;  %p444_p13 = pneg %p643_p9 }
  0x14   : > { %p443_p12 = scmp.ne.s32.totalorder %s637_s27, %s442_s4  ;;  %s447_s7 = scalar_lea.hbm %s748_s0, 256 }
  0x15   : > { %p448_p2 = scmp.lt.u32.totalorder %s637_s27, %s748_s0  ;;  %p449_p3 = scmp.lt.u32.totalorder %s447_s7, %s442_s4 }
  0x16   : > { %p445_p0 = pnand %p444_p13, %p443_p12  ;;  %p451_p5 = scmp.lt.u32.totalorder %s442_s4, %s637_s27 }
  0x17   : > { %p450_p4 = por %p449_p3, %p448_p2 }
  0x18   : > { %p446_p1 = pneg %p445_p0 }
  0x19   : > { %p452_p6 = por %p451_p5, %p450_p4 }
  0x1b   : > { %p453_p8 = pnand %p452_p6, %p446_p1 }
  0x1d   : > { %456 = shalt.err (!%p453_p8)
}
  0x1e   : > { %s457_s15 = scalar_lea.vmem %s647_s29, 128  ;;  %s558_s17 = smov [#allocation2]  }
  0x1f   : > { %p458_p12 = scmp.ne.s32.totalorder %s647_s29, %s457_s15  ;;  %s462_s18 = sshll.u32 %s558_s17, 4  ;;  %s463_s18 = int_to_ptr.vmem [resolvable:$false] %s462_s18 }
  0x20   : > { %s464_s19 = scalar_lea.vmem %s463_s18, 256  ;;  %p465_p11 = scmp.lt.s32.totalorder %s647_s29, %s463_s18 }
  0x21   : > { %p460_p0 = pnand %p458_p12, %p444_p13  ;;  %p466_p2 = scmp.lt.s32.totalorder %s464_s19, %s457_s15 }
  0x23   : > { %p461_p10 = pneg %p460_p0  ;;  %p467_p3 = por %p466_p2, %p465_p11 }
  0x25   : > { %p468_p4 = pnand %p467_p3, %p461_p10 }
  0x27   : > { %471 = shalt.err (!%p468_p4)
}
  0x28   : > { %388 = dma.hbm_to_vmem [thread:$0]  (!%p643_p9), %s637_s27, 128, %s647_s29, %s131_s3  }
  0x29   : > { %p755_p1 = scmp.lt.s32.totalorder %s556_s14, 3  ;;  %p756_p5 = scmp.ge.s32.totalorder %s556_s14, 1 }
  0x2a   : > { %s690_s4 = scalar_lea.hbm %s749_s1, %s379_s23  ;;  %s155_s5 = scalar_lea.vmem [#allocation4], %s367_s24 }
  0x2b   : > { %p681_p6 = pnand %p756_p5, %p755_p1  ;;  %s165_s6 = sshll.u32 %s155_s5, 4  ;;  %s166_s6 = int_to_ptr.vmem [resolvable:$true] %s165_s6 }
  0x2c   : > { %s152_s27 = scalar_lea.sflag [#allocation5], %s628_s22  ;;  %s472_s29 = scalar_lea.hbm %s690_s4, 128 }
  0x2d   : > { %s757_s25 = scalar_select %p681_p6, 1, 0 }
  0x2e   : > { %p473_p10 = scmp.ne.s32.totalorder %s690_s4, %s472_s29  ;;  %s477_s23 = scalar_lea.hbm %s749_s1, 256 }
  0x2f   : > { %p478_p12 = scmp.lt.u32.totalorder %s690_s4, %s749_s1  ;;  %p479_p0 = scmp.lt.u32.totalorder %s477_s23, %s472_s29 }
  0x30   : > { %p475_p11 = pnand %p473_p10, %p444_p13  ;;  %p481_p3 = scmp.lt.u32.totalorder %s472_s29, %s690_s4 }
  0x31   : > { %p480_p2 = por %p479_p0, %p478_p12 }
  0x32   : > { %p476_p8 = pneg %p475_p11 }
  0x33   : > { %p482_p4 = por %p481_p3, %p480_p2 }
  0x35   : > { %p483_p1 = pnand %p482_p4, %p476_p8 }
  0x37   : > { %486 = shalt.err (!%p483_p1)
}
  0x38   : > { %s487_s22 = scalar_lea.vmem %s166_s6, 128  ;;  %s559_s24 = smov [#allocation4]  }
  0x39   : > { %p488_p5 = scmp.ne.s32.totalorder %s166_s6, %s487_s22  ;;  %s492_s15 = sshll.u32 %s559_s24, 4  ;;  %s493_s15 = int_to_ptr.vmem [resolvable:$false] %s492_s15 }
  0x3a   : > { %s494_s17 = scalar_lea.vmem %s493_s15, 256  ;;  %p495_p7 = scmp.lt.s32.totalorder %s166_s6, %s493_s15 }
  0x3b   : > { %p490_p10 = pnand %p488_p5, %p444_p13  ;;  %p496_p6 = scmp.lt.s32.totalorder %s494_s17, %s487_s22 }
  0x3d   : > { %p491_p11 = pneg %p490_p10  ;;  %p497_p0 = por %p496_p6, %p495_p7 }
  0x3f   : > { %p498_p12 = pnand %p497_p0, %p491_p11 }
  0x41   : > { %501 = shalt.err (!%p498_p12)
}
  0x42   : > { %391 = dma.hbm_to_vmem [thread:$0]  (!%p643_p9), %s690_s4, 128, %s166_s6, %s152_s27  }
  0x43   : > { %p758_p8 = scmp.ne.s32.totalorder %s757_s25, 0 }
  0x44   : > { %s176_s18 = sand.u32 (!%p758_p8), 1, %s540_s10   ;;  %p759_p13 = scmp.ne.s32.totalorder (!%p758_p8), %s753_s20, 0 }
  0x45   : > { %174 = sbr.rel (%p758_p8) target bundleno = 245 (0xf5), region = 28  ;;  %s374_s19 = sshll.u32 (!%p758_p8), %s176_s18, 3 }
  0x46   : > { %s177_s26 = scalar_lea.sflag (!%p758_p8), [#allocation3], %s176_s18  ;;  %s180_s28 = scalar_lea.vmem (!%p758_p8), [#allocation2], %s374_s19 }
  0x4c   : > { %527 = dma.done.wait (%p759_p13), %s177_s26, 128  }
  0x4d   : > { %529 = vsyncadd (%p759_p13), %s177_s26, 4294967168  ;;  %s186_s5 = scalar_lea.sflag [#allocation5], %s176_s18  ;;  %s189_s29 = scalar_lea.vmem [#allocation4], %s374_s19 }
  0x4e   : > { %531 = dma.done.wait (%p759_p13), %s186_s5, 128  }
  0x4f   : > { %533 = vsyncadd (%p759_p13), %s186_s5, 4294967168  ;;  %p216_p7 = scmp.lt.s32.totalorder %s548_s12, 1  ;;  %vm224_vm0 = vcmask 10240   ;;  %v560_v0 = vmov 0.0   ;;  %v226_v1 = vld [vmem:[%s180_s28] sm:$0xee] }
  0x50   : > { %v227_v2 = vld [vmem:[%s189_s29] sm:$0xee]  ;;  %vm233_vm1 = vcmask 1043457   ;;  %vm243_vm2 = vcmask 2048   ;;  %vm259_vm3 = vcmask 10248  }
  0x51   : > { %s768_s12 = smov (!%p216_p7, %s548_s12), 1  ;;  %v229_v3 = vmul.f32 %v227_v2, %v226_v1  ;;  %v246_v4 = vadd.f32 %v227_v2, %v226_v1 }
  0x52   : > { %s376_s30 = sshll.u32 %s768_s12, 2 }
  0x53   : > { %s219_s6 = scalar_lea.vmem %s750_s2, %s376_s30  ;;  %v231_v5 = vcombine.high %v229_v3, %v229_v3  ;;  %v234_v6 = vsel %vm233_vm1, %v229_v3, 0.0  ;;  %v248_v7 = vcombine.high %v246_v4, %v246_v4  ;;  %v250_v9 = vsel %vm233_vm1, %v246_v4, 0.0 }
  0x54   : > { %225 = vst.msk [vmem:[%s219_s6] sm:$0x7] %vm224_vm0, %v560_v0 }
  0x55   : > { %v235_v8 = vsel %vm233_vm1, %v231_v5, 0.0  ;;  %v251_v10 = vsel %vm233_vm1, %v248_v7, 0.0 }
  0x56   : > { %v236_v11 = vadd.f32 %v235_v8, %v234_v6  ;;  %v252_v12 = vadd.f32 %v251_v10, %v250_v9 }
  0x58   : > { %237 = vadd.xlane.f32.xlu0 %v236_v11 }
  0x5b   : > { %v228_v14 = vld [vmem:[%s219_s6] sm:$0x7] }
  0x5c   : > { %253 = vadd.xlane.f32.xlu0 %v252_v12 }
  0xe5   : > { %v238_v13 = vpop.xlane.xlu0 %237 }
  0xe6   : > { %v240_v15 = vrot.slane %v238_v13, 1 }
  0xe8   : > { %v242_v16 = vadd.f32 %v240_v15, %v228_v14 }
  0xe9   : > { %v254_v17 = vpop.xlane.xlu0 %253 }
  0xea   : > { %244 = vst.msk [vmem:[%s219_s6] sm:$0x7] %vm243_vm2, %v242_v16  ;;  %v256_v18 = vrot.slane %v254_v17, 1 }
  0xf1   : > { %v245_v19 = vld [vmem:[%s219_s6] sm:$0x7] }
  0xf2   : > { %v258_v20 = vadd.f32 %v256_v18, %v245_v19 }
  0xf4   : > { %260 = vst.msk [vmem:[%s219_s6] sm:$0x7] %vm259_vm3, %v258_v20 }
  0xf5 PF: > { %s18_s14 = sadd.s32 1, %s556_s14   ;;  %s760_s9 = smov %s540_s10 }
  0xf6   : > { %p15_p9 = scmp.ge.s32.totalorder %s18_s14, 4   ;;  %s761_s10 = smov %s544_s11 }
  0xf7   : > { %s762_s11 = smov %s625_s21  ;;  %s763_s12 = smov %s552_s13 }
  0xf8   : > { %s764_s13 = smov %s766_s16  ;;  %17 = sbr.rel (!%p15_p9) target bundleno = 6 (0x6), region = 85 }
  0xff   :  { %280 = vsyncpa [#allocation3], 1 }
 0x100   :  { %282 = vsyncpa [#allocation3 + $0x1], 1 }
 0x101   :  { %283 = vsyncpa [#allocation5], 1 }
 0x102   :  { %285 = vsyncpa [#allocation5 + $0x1], 1 }

</bundles_post_ra>
